<compile_context>
chip_gen: v5e
topology: v5e:2x2
jax: 0.10.0
libtpu: 0.0.40
codegen_flags: <defaults>
</compile_context>

<pallas_src>
import functools

import jax
import jax.numpy as jnp
from jax.experimental import pallas as pl
from jax.experimental.pallas import tpu as pltpu


def _round_up(x, m):
    return ((x + m - 1) // m) * m


def _vmem_limit(need_bytes):
    # Headroom on top of the explicit budget; clamp so it is valid on v7x too.
    return int(min(max(int(need_bytes * 1.5) + (4 << 20), 16 << 20), 64 << 20))


def _bag_counts(ids_ref, base, tile_v, seq_len, out_dtype):
    """bag[b, v] = #{s : ids[b, s] == base + v}, shape (TB, tile_v)."""
    tb = ids_ref.shape[0]
    # Single hoisted 2-D lane iota; per-s accumulation in int32 (one cast at end).
    iota = base + jax.lax.broadcasted_iota(jnp.int32, (tb, tile_v), 1)
    bag = jnp.zeros((tb, tile_v), jnp.int32)
    if seq_len <= 64:
        ids = ids_ref[...]                               # (TB, S) int32
        for j in range(seq_len):                         # static unroll (small S)
            bag = bag + (ids[:, j:j + 1] == iota).astype(jnp.int32)
    else:
        def body(j, b):
            col = ids_ref[:, pl.ds(j, 1)]                # (TB, 1) dynamic lane slice
            return b + (col == iota).astype(jnp.int32)
        bag = jax.lax.fori_loop(0, seq_len, body, bag)
    return bag.astype(out_dtype)


# ---------------------------------------------------------------------------
# Fast path: whole (padded) table resident in VMEM, single fused kernel.
# Grid = (batch_tiles,)  [parallel]
# ---------------------------------------------------------------------------
def fasttext_fused_kernel(ids_ref, emb_ref, wt_ref, b_ref, out_ref, *, seq_len):
    bag = _bag_counts(ids_ref, 0, emb_ref.shape[0], seq_len, emb_ref.dtype)
    # (TB, Vp) @ (Vp, Dp) -> f32 accumulate on the MXU, then one mul for the mean.
    m = jnp.dot(bag, emb_ref[...],
                preferred_element_type=jnp.float32) * (1.0 / float(seq_len))
    logits = jnp.dot(m, wt_ref[...],
                     preferred_element_type=jnp.float32) + b_ref[...]
    # Numerically stable softmax; padded label columns carry -1e30 bias -> 0 mass.
    z = logits - jnp.max(logits, axis=-1, keepdims=True)
    e = jnp.exp(z)
    out_ref[...] = e / jnp.sum(e, axis=-1, keepdims=True)   # exact divide


# ---------------------------------------------------------------------------
# Large-vocab path, stage 1: mean over S via bag matmul, reduced over vocab
# tiles.  Grid = (batch_tiles [parallel], vocab_tiles [arbitrary]).
# The (TB, Dp) output block is resident across the vocab axis -> accumulate
# in place (no scratch).
# ---------------------------------------------------------------------------
def mean_reduce_kernel(ids_ref, emb_ref, mean_ref, *, seq_len, tile_v):
    k = pl.program_id(1)

    @pl.when(k == 0)
    def _init():
        mean_ref[...] = jnp.zeros_like(mean_ref)

    bag = _bag_counts(ids_ref, k * tile_v, tile_v, seq_len, emb_ref.dtype)
    mean_ref[...] += jnp.dot(bag, emb_ref[...],
                             preferred_element_type=jnp.float32)

    @pl.when(k == pl.num_programs(1) - 1)
    def _finalize():
        mean_ref[...] *= (1.0 / float(seq_len))


# ---------------------------------------------------------------------------
# Large-vocab path, stage 2: linear + softmax epilogue (tiny, runs once per
# batch tile, keeps the dense weight out of the reduction kernel's VMEM).
# ---------------------------------------------------------------------------
def dense_softmax_kernel(m_ref, wt_ref, b_ref, out_ref):
    logits = jnp.dot(m_ref[...], wt_ref[...],
                     preferred_element_type=jnp.float32) + b_ref[...]
    z = logits - jnp.max(logits, axis=-1, keepdims=True)
    e = jnp.exp(z)
    out_ref[...] = e / jnp.sum(e, axis=-1, keepdims=True)   # exact divide


def fasttext_forward(ids, emb_table, weight, bias, *,
                     table_dtype=jnp.bfloat16,
                     tile_v=1024, tile_b=512,
                     force_reduction_path=False):
    """ids: (B, S) int; emb_table: (V, D); weight: (L, D); bias: (L,)."""
    B, S = ids.shape
    V, D = emb_table.shape
    L, D2 = weight.shape
    assert D2 == D, "weight must be (label_num, dim)"

    # Bag counts are only exact in bf16 for counts <= 256.
    if S > 256 and jnp.dtype(table_dtype) == jnp.dtype(jnp.bfloat16):
        table_dtype = jnp.float32
    itm = jnp.dtype(table_dtype).itemsize

    # Lane-dense padding for the MXU / stores.
    Dp = _round_up(D, 128)
    Lp = _round_up(L, 128)

    # Batch tile as large as practical: table HBM traffic scales with the
    # number of batch tiles (the table index_map ignores the batch index).
    Bp8 = _round_up(max(B, 8), 8)
    TB = min(_round_up(tile_b, 8), Bp8)
    Bp = _round_up(Bp8, TB)

    ids_p = jnp.zeros((Bp, S), jnp.int32).at[:B].set(ids.astype(jnp.int32))
    # Linear weight pre-transposed once in the wrapper (no in-kernel XLU transpose).
    wt_p = jnp.zeros((Dp, Lp), jnp.float32).at[:D, :L].set(
        weight.astype(jnp.float32).T)
    # Padded label columns get a very negative bias -> ~0 softmax mass.
    b_p = jnp.full((1, Lp), -1e30, jnp.float32).at[0, :L].set(
        bias.astype(jnp.float32))

    # ---------------- fast path decision (explicit VMEM byte budget) --------
    Vp_fast = _round_up(V, 16)
    fast_need = (2 * TB * S * 4            # ids (double-buffered)
                 + 2 * Vp_fast * Dp * itm  # full table
                 + 2 * Dp * Lp * 4         # dense weight
                 + 2 * Lp * 4              # bias
                 + 2 * TB * Lp * 4         # output
                 + 4 * TB * Vp_fast * 4    # bag working set
                 + 2 * TB * Dp * 4)        # mean working set
    use_fast = (not force_reduction_path) and fast_need <= (24 << 20)

    if use_fast:
        Vp = Vp_fast
        emb_p = jnp.zeros((Vp, Dp), table_dtype).at[:V, :D].set(
            emb_table.astype(table_dtype))
        out = pl.pallas_call(
            functools.partial(fasttext_fused_kernel, seq_len=S),
            out_shape=jax.ShapeDtypeStruct((Bp, Lp), jnp.float32),
            grid_spec=pltpu.PrefetchScalarGridSpec(
                num_scalar_prefetch=0,
                grid=(Bp // TB,),
                in_specs=[
                    pl.BlockSpec((TB, S), lambda i: (i, 0)),     # ids
                    pl.BlockSpec((Vp, Dp), lambda i: (0, 0)),    # full table
                    pl.BlockSpec((Dp, Lp), lambda i: (0, 0)),    # weight (D, L)
                    pl.BlockSpec((1, Lp), lambda i: (0, 0)),     # bias
                ],
                out_specs=pl.BlockSpec((TB, Lp), lambda i: (i, 0)),
            ),
            compiler_params=pltpu.CompilerParams(
                dimension_semantics=("parallel",),
                vmem_limit_bytes=_vmem_limit(fast_need),
            ),
        )(ids_p, emb_p, wt_p, b_p)
        return out[:B, :L]

    # ---------------- large-vocab tiled reduction path ----------------------
    TV = min(_round_up(tile_v, 128), _round_up(V, 128))
    Vp = _round_up(V, TV)
    emb_p = jnp.zeros((Vp, Dp), table_dtype).at[:V, :D].set(
        emb_table.astype(table_dtype))

    red_need = (2 * TB * S * 4 + 2 * TV * Dp * itm + 2 * TB * Dp * 4
                + 4 * TB * TV * 4)
    mean = pl.pallas_call(
        functools.partial(mean_reduce_kernel, seq_len=S, tile_v=TV),
        out_shape=jax.ShapeDtypeStruct((Bp, Dp), jnp.float32),
        grid_spec=pltpu.PrefetchScalarGridSpec(
            num_scalar_prefetch=0,
            grid=(Bp // TB, Vp // TV),
            in_specs=[
                pl.BlockSpec((TB, S), lambda i, k: (i, 0)),      # ids
                pl.BlockSpec((TV, Dp), lambda i, k: (k, 0)),     # table tile
            ],
            out_specs=pl.BlockSpec((TB, Dp), lambda i, k: (i, 0)),
        ),
        compiler_params=pltpu.CompilerParams(
            dimension_semantics=("parallel", "arbitrary"),
            vmem_limit_bytes=_vmem_limit(red_need),
        ),
    )(ids_p, emb_p)

    ep_need = 2 * TB * Dp * 4 + 2 * Dp * Lp * 4 + 2 * Lp * 4 + 2 * TB * Lp * 4
    out = pl.pallas_call(
        dense_softmax_kernel,
        out_shape=jax.ShapeDtypeStruct((Bp, Lp), jnp.float32),
        grid_spec=pltpu.PrefetchScalarGridSpec(
            num_scalar_prefetch=0,
            grid=(Bp // TB,),
            in_specs=[
                pl.BlockSpec((TB, Dp), lambda i: (i, 0)),        # mean
                pl.BlockSpec((Dp, Lp), lambda i: (0, 0)),        # weight (D, L)
                pl.BlockSpec((1, Lp), lambda i: (0, 0)),         # bias
            ],
            out_specs=pl.BlockSpec((TB, Lp), lambda i: (i, 0)),
        ),
        compiler_params=pltpu.CompilerParams(
            dimension_semantics=("parallel",),
            vmem_limit_bytes=_vmem_limit(ep_need),
        ),
    )(mean, wt_p, b_p)
    return out[:B, :L]


def _reference(ids, tab, w, b):
    m = jnp.mean(tab[ids], axis=1)
    return jax.nn.softmax(m @ w.T + b, axis=-1)


if __name__ == "__main__":
    # Small shapes consistent with the module's forward.
    vocab_size, dim, label_num, batch, seq = 32, 32, 16, 4, 8

    key = jax.random.PRNGKey(0)
    k_ids, k_emb, k_w, k_b, k_ids2, k_emb2 = jax.random.split(key, 6)

    ids = jax.random.randint(k_ids, (batch, seq), 0, vocab_size, dtype=jnp.int32)
    emb_table = jax.random.normal(k_emb, (vocab_size, dim), dtype=jnp.float32)
    weight = jax.random.normal(k_w, (label_num, dim), dtype=jnp.float32) * 0.1
    bias = jax.random.normal(k_b, (label_num,), dtype=jnp.float32) * 0.1

    # 1) Default path: fused small-vocab kernel, bf16 table.
    out = fasttext_forward(ids, emb_table, weight, bias)
    out = jax.block_until_ready(out)
    ref = _reference(ids, emb_table, weight, bias)
    assert out.shape == (batch, label_num)
    assert jnp.allclose(out, ref, atol=5e-3, rtol=5e-3), "fast-path mismatch"
    assert jnp.allclose(jnp.sum(out, axis=-1), 1.0, atol=1e-5), "rows not normalized"

    # 2) Tiled vocab-reduction path + split epilogue (multiple vocab tiles),
    #    f32 table for a tighter numeric check.
    vocab2, dim2, batch2 = 300, 100, 16
    ids2 = jax.random.randint(k_ids2, (batch2, seq), 0, vocab2, dtype=jnp.int32)
    emb2 = jax.random.normal(k_emb2, (vocab2, dim2), dtype=jnp.float32)
    w2 = jax.random.normal(k_w, (label_num, dim2), dtype=jnp.float32) * 0.1
    out2 = fasttext_forward(ids2, emb2, w2, bias, table_dtype=jnp.float32,
                            tile_v=128, force_reduction_path=True)
    out2 = jax.block_until_ready(out2)
    ref2 = _reference(ids2, emb2, w2, bias)
    assert out2.shape == (batch2, label_num)
    assert jnp.allclose(out2, ref2, atol=5e-3, rtol=5e-3), "reduction-path mismatch"

    print("KERNEL_OK")
</pallas_src>

<mosaic_0001>
module attributes {stable_mosaic.version = 11 : i64} {
  func.func @fasttext_fused_kernel(%arg0: i32, %arg1: memref<8x8xi32, #tpu.memory_space<vmem>>, %arg2: memref<32x128xbf16, #tpu.memory_space<vmem>>, %arg3: memref<128x128xf32, #tpu.memory_space<vmem>>, %arg4: memref<1x128xf32, #tpu.memory_space<vmem>>, %arg5: memref<8x128xf32, #tpu.memory_space<vmem>>) attributes {dimension_semantics = [#tpu.dimension_semantics<parallel>], iteration_bounds = array<i64: 1>, scalar_prefetch = 0 : i64, scratch_operands = 0 : i64, tpu.core_type = #tpu.core_type<tc>, window_params = [{transform_indices = @transform_0, window_bounds = array<i64: 8, 8>}, {pipeline_mode = #tpu.pipeline_mode<synchronous>, transform_indices = @transform_1, window_bounds = array<i64: 32, 128>}, {pipeline_mode = #tpu.pipeline_mode<synchronous>, transform_indices = @transform_2, window_bounds = array<i64: 128, 128>}, {pipeline_mode = #tpu.pipeline_mode<synchronous>, transform_indices = @transform_3, window_bounds = array<i64: 1, 128>}, {transform_indices = @transform_4, window_bounds = array<i64: 8, 128>}]} {
    %0 = tpu.iota {dimensions = array<i32: 1>} : vector<8x32xi32>
    %c0_i32 = arith.constant 0 : i32
    %1 = vector.broadcast %c0_i32 : i32 to vector<8x32xi32>
    %2 = arith.addi %1, %0 : vector<8x32xi32>
    %c0_i32_0 = arith.constant 0 : i32
    %3 = vector.broadcast %c0_i32_0 : i32 to vector<8x32xi32>
    %c0 = arith.constant 0 : index
    %c0_1 = arith.constant 0 : index
    %4 = vector.load %arg1[%c0, %c0_1] : memref<8x8xi32, #tpu.memory_space<vmem>>, vector<8x8xi32>
    %5 = vector.extract_strided_slice %4 {offsets = [0, 0], sizes = [8, 1], strides = [1, 1]} : vector<8x8xi32> to vector<8x1xi32>
    %6 = vector.broadcast %5 : vector<8x1xi32> to vector<8x32xi32>
    %7 = arith.cmpi eq, %6, %2 : vector<8x32xi32>
    %8 = arith.extui %7 : vector<8x32xi1> to vector<8x32xi32>
    %9 = arith.addi %3, %8 : vector<8x32xi32>
    %10 = vector.extract_strided_slice %4 {offsets = [0, 1], sizes = [8, 1], strides = [1, 1]} : vector<8x8xi32> to vector<8x1xi32>
    %11 = vector.broadcast %10 : vector<8x1xi32> to vector<8x32xi32>
    %12 = arith.cmpi eq, %11, %2 : vector<8x32xi32>
    %13 = arith.extui %12 : vector<8x32xi1> to vector<8x32xi32>
    %14 = arith.addi %9, %13 : vector<8x32xi32>
    %15 = vector.extract_strided_slice %4 {offsets = [0, 2], sizes = [8, 1], strides = [1, 1]} : vector<8x8xi32> to vector<8x1xi32>
    %16 = vector.broadcast %15 : vector<8x1xi32> to vector<8x32xi32>
    %17 = arith.cmpi eq, %16, %2 : vector<8x32xi32>
    %18 = arith.extui %17 : vector<8x32xi1> to vector<8x32xi32>
    %19 = arith.addi %14, %18 : vector<8x32xi32>
    %20 = vector.extract_strided_slice %4 {offsets = [0, 3], sizes = [8, 1], strides = [1, 1]} : vector<8x8xi32> to vector<8x1xi32>
    %21 = vector.broadcast %20 : vector<8x1xi32> to vector<8x32xi32>
    %22 = arith.cmpi eq, %21, %2 : vector<8x32xi32>
    %23 = arith.extui %22 : vector<8x32xi1> to vector<8x32xi32>
    %24 = arith.addi %19, %23 : vector<8x32xi32>
    %25 = vector.extract_strided_slice %4 {offsets = [0, 4], sizes = [8, 1], strides = [1, 1]} : vector<8x8xi32> to vector<8x1xi32>
    %26 = vector.broadcast %25 : vector<8x1xi32> to vector<8x32xi32>
    %27 = arith.cmpi eq, %26, %2 : vector<8x32xi32>
    %28 = arith.extui %27 : vector<8x32xi1> to vector<8x32xi32>
    %29 = arith.addi %24, %28 : vector<8x32xi32>
    %30 = vector.extract_strided_slice %4 {offsets = [0, 5], sizes = [8, 1], strides = [1, 1]} : vector<8x8xi32> to vector<8x1xi32>
    %31 = vector.broadcast %30 : vector<8x1xi32> to vector<8x32xi32>
    %32 = arith.cmpi eq, %31, %2 : vector<8x32xi32>
    %33 = arith.extui %32 : vector<8x32xi1> to vector<8x32xi32>
    %34 = arith.addi %29, %33 : vector<8x32xi32>
    %35 = vector.extract_strided_slice %4 {offsets = [0, 6], sizes = [8, 1], strides = [1, 1]} : vector<8x8xi32> to vector<8x1xi32>
    %36 = vector.broadcast %35 : vector<8x1xi32> to vector<8x32xi32>
    %37 = arith.cmpi eq, %36, %2 : vector<8x32xi32>
    %38 = arith.extui %37 : vector<8x32xi1> to vector<8x32xi32>
    %39 = arith.addi %34, %38 : vector<8x32xi32>
    %40 = vector.extract_strided_slice %4 {offsets = [0, 7], sizes = [8, 1], strides = [1, 1]} : vector<8x8xi32> to vector<8x1xi32>
    %41 = vector.broadcast %40 : vector<8x1xi32> to vector<8x32xi32>
    %42 = arith.cmpi eq, %41, %2 : vector<8x32xi32>
    %43 = arith.extui %42 : vector<8x32xi1> to vector<8x32xi32>
    %44 = arith.addi %39, %43 : vector<8x32xi32>
    %45 = arith.sitofp %44 : vector<8x32xi32> to vector<8x32xbf16>
    %c0_2 = arith.constant 0 : index
    %c0_3 = arith.constant 0 : index
    %46 = vector.load %arg2[%c0_2, %c0_3] : memref<32x128xbf16, #tpu.memory_space<vmem>>, vector<32x128xbf16>
    %cst = arith.constant dense<0.000000e+00> : vector<8x128xf32>
    %47 = tpu.matmul %45, %46, %cst {dimension_numbers = #tpu.dot_dimension_numbers<[1], [0], [0], [1], [0, 0, 1, 1], [], []>} : vector<8x32xbf16>, vector<32x128xbf16>, vector<8x128xf32> -> vector<8x128xf32>
    %cst_4 = arith.constant 1.250000e-01 : f32
    %48 = vector.broadcast %cst_4 : f32 to vector<8x128xf32>
    %49 = arith.mulf %47, %48 : vector<8x128xf32>
    %c0_5 = arith.constant 0 : index
    %c0_6 = arith.constant 0 : index
    %50 = vector.load %arg3[%c0_5, %c0_6] : memref<128x128xf32, #tpu.memory_space<vmem>>, vector<128x128xf32>
    %cst_7 = arith.constant dense<0.000000e+00> : vector<8x128xf32>
    %51 = tpu.matmul %49, %50, %cst_7 {dimension_numbers = #tpu.dot_dimension_numbers<[1], [0], [0], [1], [0, 0, 1, 1], [], []>} : vector<8x128xf32>, vector<128x128xf32>, vector<8x128xf32> -> vector<8x128xf32>
    %c0_8 = arith.constant 0 : index
    %c0_9 = arith.constant 0 : index
    %52 = vector.load %arg4[%c0_8, %c0_9] : memref<1x128xf32, #tpu.memory_space<vmem>>, vector<1x128xf32>
    %53 = vector.broadcast %52 : vector<1x128xf32> to vector<8x128xf32>
    %54 = arith.addf %51, %53 : vector<8x128xf32>
    %cst_10 = arith.constant dense<0xFF800000> : vector<8xf32>
    %55 = vector.multi_reduction <maximumf>, %54, %cst_10 [1] : vector<8x128xf32> to vector<8xf32>
    %56 = vector.shape_cast %55 : vector<8xf32> to vector<8x1xf32>
    %57 = vector.broadcast %56 : vector<8x1xf32> to vector<8x128xf32>
    %58 = arith.subf %54, %57 : vector<8x128xf32>
    %59 = math.exp %58 : vector<8x128xf32>
    %cst_11 = arith.constant dense<0.000000e+00> : vector<8xf32>
    %60 = vector.multi_reduction <add>, %59, %cst_11 [1] : vector<8x128xf32> to vector<8xf32>
    %61 = vector.shape_cast %60 : vector<8xf32> to vector<8x1xf32>
    %62 = vector.broadcast %61 : vector<8x1xf32> to vector<8x128xf32>
    %63 = arith.divf %59, %62 : vector<8x128xf32>
    %c0_12 = arith.constant 0 : index
    %c0_13 = arith.constant 0 : index
    %64 = vector.load %arg5[%c0_12, %c0_13] : memref<8x128xf32, #tpu.memory_space<vmem>>, vector<8x128xf32>
    tpu.vector_store %arg5[%c0_12, %c0_13], %63 {strides = array<i32>} : memref<8x128xf32, #tpu.memory_space<vmem>>, vector<8x128xf32>,
    return
  }
  func.func @transform_0(%arg0: i32) -> (i32, i32) {
    %c0_i32 = arith.constant 0 : i32
    %c0_i32_0 = arith.constant 0 : i32
    return %arg0, %c0_i32 : i32, i32
  }
  func.func @transform_1(%arg0: i32) -> (i32, i32) {
    %c0_i32 = arith.constant 0 : i32
    %c0_i32_0 = arith.constant 0 : i32
    %c0_i32_1 = arith.constant 0 : i32
    return %c0_i32, %c0_i32_0 : i32, i32
  }
  func.func @transform_2(%arg0: i32) -> (i32, i32) {
    %c0_i32 = arith.constant 0 : i32
    %c0_i32_0 = arith.constant 0 : i32
    %c0_i32_1 = arith.constant 0 : i32
    return %c0_i32, %c0_i32_0 : i32, i32
  }
  func.func @transform_3(%arg0: i32) -> (i32, i32) {
    %c0_i32 = arith.constant 0 : i32
    %c0_i32_0 = arith.constant 0 : i32
    %c0_i32_1 = arith.constant 0 : i32
    return %c0_i32, %c0_i32_0 : i32, i32
  }
  func.func @transform_4(%arg0: i32) -> (i32, i32) {
    %c0_i32 = arith.constant 0 : i32
    %c0_i32_0 = arith.constant 0 : i32
    return %arg0, %c0_i32 : i32, i32
  }
}

</mosaic_0001>

<bundles_post_ra>
// kernel: tpu_custom_call.1
= control target key start
LH: loop header
LB: loop body
LE: loop exit
PB: predicated region body
PF: predicated region fallthrough
CT: control target
= control target key end

     0   :  { %9 = vsyncpa [#allocation3], 0  ;;  %s439_s0 = inlined_call_operand.hbm [shape: s32[8,8], index: 0, kind: input, shape index: {}]   ;;  %s440_s1 = inlined_call_operand.hbm [shape: bf16[32,128], index: 1, kind: input, shape index: {}]   ;;  %s441_s2 = inlined_call_operand.hbm [shape: f32[128,128], index: 2, kind: input, shape index: {}]   ;;  %s442_s3 = inlined_call_operand.vmem [shape: f32[1,128], index: 3, kind: input, shape index: {}]   ;;  %s443_s4 = inlined_call_operand.hbm [shape: f32[8,128], index: 4, kind: output, shape index: {}]  }
   0x1   :  { %10 = vsyncpa [#allocation6], 0  ;;  %s27_s17 = sshll.u32 %s440_s1, 4  ;;  %s28_s17 = int_to_ptr.hbm [resolvable:$true] %s27_s17 }
   0x2   :  { %11 = vsyncpa [#allocation4], 0  ;;  %s374_s18 = smov [#allocation5]   ;;  %s17_s22 = sshll.u32 %s439_s0, 4  ;;  %s18_s22 = int_to_ptr.hbm [resolvable:$true] %s17_s22 }
   0x3   :  { %s29_s19 = sshll.u32 %s374_s18, 4  ;;  %s375_s23 = smov 64   ;;  %s30_s19 = int_to_ptr.vmem [resolvable:$true] %s29_s19 }
   0x4   :  { %s376_s24 = smov 4   ;;  %s377_s25 = smov [#allocation2]  }
   0x5   :  { %35 = dma.hbm_to_vmem [thread:$0]  %s28_s17, 256, %s30_s19, [#allocation6], %s375_s23, %s375_s23, %s376_s24  }
   0x6   :  { %s19_s26 = sshll.u32 %s377_s25, 4  ;;  %s40_s29 = sshll.u32 %s441_s2, 4  ;;  %s20_s26 = int_to_ptr.vmem [resolvable:$true] %s19_s26  ;;  %s41_s29 = int_to_ptr.hbm [resolvable:$true] %s40_s29 }
   0x7   :  { %22 = dma.hbm_to_vmem [thread:$0]  %s18_s22, 128, %s20_s26, [#allocation3]  }
   0x8   :  { %s378_s1 = smov [#allocation7]   ;;  %s379_s5 = smov 128  }
   0x9   :  { %s42_s30 = sshll.u32 %s378_s1, 4  ;;  %s380_s6 = smov 8   ;;  %s43_s30 = int_to_ptr.vmem [resolvable:$true] %s42_s30 }
   0xa   :  { %48 = dma.hbm_to_vmem [thread:$0]  %s41_s29, 2048, %s43_s30, [#allocation6], %s379_s5, %s379_s5, %s380_s6  }
   0xb   :  { %368 = dma.done.wait [#allocation3], 128  }
   0xc   :  { %369 = vsyncadd [#allocation3], 4294967168 }
   0xd   :  { %370 = dma.done.wait [#allocation6], 2304  }
   0xe   :  { %371 = vsyncadd [#allocation6], 4294964992  ;;  %v381_v0 = vmov 0   ;;  %v382_v1 = vmov 2   ;;  %v383_v2 = vmov 4   ;;  %v66_v3 = vld [vmem:[#allocation2] sm:$0xff]  ;;  %v64_v14 = vlaneseq }
   0xf   :  { %258 = vset.pattern.permute.xlu0 %v381_v0  ;;  %260 = vset.pattern.permute.xlu1 %v382_v1  ;;  %v384_v4 = vmov 1   ;;  %v385_v5 = vmov 3   ;;  %v386_v6 = vmov 5   ;;  %v387_v7 = vmov 6   ;;  %v241_v9 = vld [vmem:[#allocation5 + $0x8] sm:$0xff]  ;;  %v240_v10 = vld [vmem:[#allocation5] sm:$0xff] }
  0x10   :  { %262 = vset.pattern.permute.xlu2 %v383_v2  ;;  %68 = vperm.xlu0 %258, %v66_v3   ;;  %v388_v8 = vmov 7   ;;  %v165_v12 = vld [vmem:[#allocation7 + $0x78] sm:$0xff]  ;;  %v164_v13 = vld [vmem:[#allocation7 + $0x70] sm:$0xff]  ;;  %v163_v17 = vld [vmem:[#allocation7 + $0x68] sm:$0xff]  ;;  %v65_v19 = vand.u32 127, %v64_v14  ;;  %vm132_vm8 = vcmask 261120  }
  0x11   :  { %79 = vperm.xlu1 %260, %v66_v3   ;;  %91 = vperm.xlu2 %262, %v66_v3   ;;  %v162_v18 = vld [vmem:[#allocation7 + $0x60] sm:$0xff]  ;;  %v161_v20 = vld [vmem:[#allocation7 + $0x58] sm:$0xff]  ;;  %v160_v22 = vld [vmem:[#allocation7 + $0x50] sm:$0xff]  ;;  %s220_s10 = sshll.u32 %s443_s4, 4  ;;  %s221_s10 = int_to_ptr.hbm [resolvable:$true] %s220_s10 }
  0x12   :  { %142 = vmatpush.bf16.msra.mxu0 %v241_v9  ;;  %170 = vmatpush.msra.mxu1 %v165_v12  ;;  %v159_v23 = vld [vmem:[#allocation7 + $0x48] sm:$0xff]  ;;  %v158_v26 = vld [vmem:[#allocation7 + $0x40] sm:$0xff]  ;;  %v157_v30 = vld [vmem:[#allocation7 + $0x38] sm:$0xff] }
  0x13   :  { %v156_v33 = vld [vmem:[#allocation7 + $0x30] sm:$0xff]  ;;  %v155_v37 = vld [vmem:[#allocation7 + $0x28] sm:$0xff]  ;;  %v154_v41 = vld [vmem:[#allocation7 + $0x20] sm:$0xff] }
  0x14   :  { %171 = vmatpush.msra.mxu1 %v164_v13  ;;  %v153_v45 = vld [vmem:[#allocation7 + $0x18] sm:$0xff]  ;;  %v152_v48 = vld [vmem:[#allocation7 + $0x10] sm:$0xff]  ;;  %v151_v52 = vld [vmem:[#allocation7 + $0x8] sm:$0xff] }
  0x15   :  { %v150_v53 = vld [vmem:[#allocation7] sm:$0xff]  ;;  %v267_v57 = vld [vmem:[%s442_s3] ss:$0 sm:$0xff]  ;;  %s389_s3 = smov [#allocation8]  }
  0x16   :  { %143 = vmatpush.bf16.msra.mxu0 %v240_v10  ;;  %172 = vmatpush.msra.mxu1 %v163_v17  ;;  %s218_s7 = sshll.u32 %s389_s3, 4  ;;  %s219_s7 = int_to_ptr.vmem [resolvable:$true] %s218_s7 }
  0x18   :  { %259 = vset.pattern.permute.xlu0 %v384_v4  ;;  %173 = vmatpush.msra.mxu1 %v162_v18 }
  0x19   :  { %261 = vset.pattern.permute.xlu1 %v385_v5  ;;  %73 = vperm.xlu0 %259, %v66_v3  }
  0x1a   :  { %85 = vperm.xlu1 %261, %v66_v3   ;;  %263 = vset.pattern.permute.xlu2 %v386_v6 }
  0x1b   :  { %97 = vperm.xlu2 %263, %v66_v3   ;;  %174 = vmatpush.msra.mxu1 %v161_v20 }
  0x1d   :  { %175 = vmatpush.msra.mxu1 %v160_v22 }
  0x1f   :  { %176 = vmatpush.msra.mxu1 %v159_v23 }
  0x21   :  { %266 = vset.pattern.permute.xlu0 %v388_v8  ;;  %177 = vmatpush.msra.mxu1 %v158_v26 }
  0x22   :  { %264 = vset.pattern.permute.xlu1 %v387_v7 }
  0x23   :  { %103 = vperm.xlu1 %264, %v66_v3   ;;  %265 = vset.pattern.permute.xlu2 %v388_v8 }
  0x24   :  { %109 = vperm.xlu2 %265, %v66_v3   ;;  %178 = vmatpush.msra.mxu1 %v157_v30 }
  0x26   :  { %179 = vmatpush.msra.mxu1 %v156_v33 }
  0x28   :  { %180 = vmatpush.msra.mxu1 %v155_v37 }
  0x2a   :  { %181 = vmatpush.msra.mxu1 %v154_v41 }
  0x2c   :  { %182 = vmatpush.msra.mxu1 %v153_v45 }
  0x2e   :  { %183 = vmatpush.msra.mxu1 %v152_v48 }
  0x30   :  { %184 = vmatpush.msra.mxu1 %v151_v52 }
  0x32   :  { %185 = vmatpush.msra.mxu1 %v150_v53 }
  0x6b   :  { %v92_v11 = vpop.permute.xlu2 %91 }
  0x6c   :  { %vm93_vm4 = vcmp.eq.s32.totalorder %v92_v11, %v65_v19 }
  0x6d   :  { %v94_v38 = vsel %vm93_vm4, 1, %v381_v0 }
  0x75   :  { %v98_v21 = vpop.permute.xlu2 %97 }
  0x76   :  { %vm99_vm5 = vcmp.eq.s32.totalorder %v98_v21, %v65_v19 }
  0x77   :  { %v100_v42 = vsel %vm99_vm5, 1, %v381_v0 }
  0x7e   :  { %v110_v35 = vpop.permute.xlu2 %109 }
  0x7f   :  { %vm111_vm6 = vcmp.eq.s32.totalorder %v110_v35, %v65_v19 }
  0x80   :  { %v112_v46 = vsel %vm111_vm6, 1, %v381_v0 }
  0x82   :  { %v69_v15 = vpop.permute.xlu0 %68 }
  0x83   :  { %v80_v16 = vpop.permute.xlu1 %79  ;;  %vm70_vm0 = vcmp.eq.s32.totalorder %v69_v15, %v65_v19 }
  0x84   :  { %vm81_vm1 = vcmp.eq.s32.totalorder %v80_v16, %v65_v19  ;;  %v71_v27 = vsel %vm70_vm0, 1, %v381_v0 }
  0x85   :  { %v82_v31 = vsel %vm81_vm1, 1, %v381_v0 }
  0x8b   :  { %v74_v24 = vpop.permute.xlu0 %73 }
  0x8c   :  { %v86_v25 = vpop.permute.xlu1 %85  ;;  %vm75_vm2 = vcmp.eq.s32.totalorder %v74_v24, %v65_v19 }
  0x8d   :  { %v76_v28 = vsel %vm75_vm2, 1, %v381_v0  ;;  %vm87_vm3 = vcmp.eq.s32.totalorder %v86_v25, %v65_v19 }
  0x8e   :  { %v77_v29 = vadd.s32 %v76_v28, %v71_v27  ;;  %v88_v34 = vsel %vm87_vm3, 1, %v381_v0 }
  0x90   :  { %v83_v32 = vadd.s32 %v82_v31, %v77_v29 }
  0x92   :  { %v89_v36 = vadd.s32 %v88_v34, %v83_v32 }
  0x94   :  { %v95_v39 = vadd.s32 %v94_v38, %v89_v36 }
  0x95   :  { %v104_v40 = vpop.permute.xlu1 %103 }
  0x96   :  { %vm105_vm7 = vcmp.eq.s32.totalorder %v104_v40, %v65_v19  ;;  %v101_v43 = vadd.s32 %v100_v42, %v95_v39 }
  0x97   :  { %v106_v44 = vsel %vm105_vm7, 1, %v381_v0 }
  0x98   :  { %v107_v47 = vadd.s32 %v106_v44, %v101_v43 }
  0x9a   :  { %v113_v49 = vadd.s32 %v112_v46, %v107_v47 }
  0x9c   :  { %v114_v50 = vcvt.s32.f32 %v113_v49 }
  0x9e   :  { %v115_v51 = vpack.c.bf16 %v114_v50, %v114_v50 }
  0xa0   :  { %239 = vmatmul.msk.bf16.vlgmr.msra.gmra.mxu0 %vm132_vm8, %v115_v51 }
 0x11d   :  { %v145_v54 = vpop.f32.mrf.mxu0 }
 0x11e   :  { %v149_v55 = vmul.f32 0.125, %v145_v54 }
 0x120   :  { %186 = vmatmul.f32.vlgmr.msra.gmra.mxu1 %v149_v55 }
 0x125   :  { %v147_v56 = vpop.f32.mrf.mxu0 }
 0x19d   :  { %v187_v58 = vpop.f32.mrf.mxu1 }
 0x19e   :  { %v188_v59 = vadd.f32 %v267_v57, %v187_v58 }
 0x1a0   :  { %190 = vmax.xlane.f32.xlu0 %v188_v59 }
 0x213   :  { %v191_v60 = vpop.xlane.xlu0 %190 }
 0x214   :  { %v192_v61 = vsub.f32 %v188_v59, %v191_v60 }
 0x216   :  { %v193_v62 = vmul.f32 1.442695, %v192_v61 }
 0x218   :  { %268 = vpow2.f32 %v193_v62 }
 0x21e   :  { %v269_v63 = vpop.eup %268 }
 0x21f   :  { %195 = vadd.xlane.f32.xlu1 %v269_v63 }
 0x292   :  { %v196_v0 = vpop.xlane.xlu1 %195 }
 0x293   :  { %270 = vrcp.f32 %v196_v0  ;;  %v208_v4 = vand.u32 2147483648, %v196_v0  ;;  %v206_v6 = vand.u32 2147483647, %v196_v0  ;;  %vm202_vm10 = vweird.f32 %v196_v0 }
 0x295   :  { %v209_v8 = vor.u32 1.1754944e-38, %v208_v4  ;;  %vm207_vm12 = vcmp.eq.f32.partialorder %v206_v6, 8.507059e+37 }
 0x299   :  { %v271_v1 = vpop.eup %270 }
 0x29a   :  { %v198_v2 = vmul.f32 %v271_v1, %v196_v0  ;;  %vm203_vm9 = vweird.f32 %v271_v1 }
 0x29b   :  { %vm204_vm11 = vmor %vm202_vm10, %vm203_vm9 }
 0x29c   :  { %v199_v3 = vsub.f32 1.0, %v198_v2 }
 0x29e   :  { %v200_v5 = vmul.f32 %v271_v1, %v199_v3 }
 0x2a0   :  { %v201_v7 = vadd.f32 %v271_v1, %v200_v5 }
 0x2a2   :  { %v205_v9 = vsel %vm204_vm11, %v271_v1, %v201_v7 }
 0x2a3   :  { %v210_v10 = vsel %vm207_vm12, %v209_v8, %v205_v9 }
 0x2a4   :  { %v211_v11 = vmul.f32 %v269_v63, %v210_v10 }
 0x2a6   :  { %212 = vst [vmem:[#allocation8] sm:$0xff] %v211_v11 }
 0x2a7   :  { %223 = dma.vmem_to_hbm [thread:$0]  %s219_s7, 128, %s221_s10, [#allocation4]  }
 0x2a8   :  { %372 = dma.done.wait [#allocation4], 128  }
 0x2a9   :  { %373 = vsyncadd [#allocation4], 4294967168 }
 0x2aa   :  { %228 = vsyncpa [#allocation3], 1 }
 0x2ab   :  { %229 = vsyncpa [#allocation6], 1 }
 0x2ac   :  { %230 = vsyncpa [#allocation4], 1 }

</bundles_post_ra>
